<compile_context>
chip_gen: v5e
topology: v5e:2x2
jax: 0.10.0
libtpu: 0.0.40
codegen_flags: <defaults>
</compile_context>

<pallas_src>
import jax
import jax.numpy as jnp
from jax.experimental import pallas as pl
from jax.experimental.pallas import tpu as pltpu


_LANE_ALIGN = 256  # full-width passes on v6e/v7x 2x256x256 MXU; fine on v5e (128-mult)


def _round_up(x, m):
    return (x + m - 1) // m * m


def _cdiv(a, b):
    return -(-a // b)


def _gelu_tanh(x):
    # 0.5 * x * (1 + tanh(sqrt(2/pi) * (x + 0.044715 * x^3)))  -- computed in f32
    c = jnp.sqrt(jnp.asarray(2.0 / jnp.pi, dtype=x.dtype))
    return 0.5 * x * (1.0 + jnp.tanh(c * (x + 0.044715 * x * x * x)))


def _pick_tm(m, target=256):
    # Balance padded-row waste against tile size; prefer >=2 grid steps so the
    # M axis can pipeline / shard across v7x's two TensorCores.
    n_tiles = max(1, _cdiv(m, target))
    if n_tiles < 2 and m >= 16:
        n_tiles = 2
    return min(target, max(8, _round_up(_cdiv(m, n_tiles), 8)))


def _pick_th(h_pad, target=512):
    # Largest 256-multiple <= target that divides h_pad (h_pad is a 256-multiple).
    th = min(_round_up(target, _LANE_ALIGN), h_pad)
    while h_pad % th:
        th -= _LANE_ALIGN
    return max(th, _LANE_ALIGN)


def _vmem_limit(footprint_bytes):
    # Never exceed physical VMEM (64 MiB per TensorCore on v7x); leave headroom.
    try:
        cap = int(pltpu.get_tpu_info().vmem_capacity_bytes)
    except Exception:  # noqa: BLE001 - conservative fallback if query unavailable
        cap = 64 * 1024 * 1024
    headroom = 8 * 1024 * 1024
    want = max(32 * 1024 * 1024, int(1.5 * footprint_bytes))
    return max(16 * 1024 * 1024, min(cap - headroom, want))


# --------------------------------------------------------------------------- kernel


def usta_mlp_kernel(x_ref, wgu_ref, bgu_ref, wd_ref, bd_ref, o_ref, acc_ref):
    th = wd_ref.shape[0]                     # H-chunk size (static)
    k = pl.program_id(1)                     # reduction step over H chunks

    @pl.when(k == 0)
    def _():
        acc_ref[...] = jnp.zeros_like(acc_ref)

    # One wide MXU matmul produces this chunk's [gate | up] (256-aligned split).
    gu = jnp.dot(x_ref[...], wgu_ref[...], preferred_element_type=jnp.float32)
    gu = gu + bgu_ref[...]
    gate = _gelu_tanh(gu[:, :th])            # f32, EUP tanh hides under MXU
    up = gu[:, th:]
    fuse = (gate * up).astype(wd_ref.dtype)  # back to bf16 for the down matmul
    acc_ref[...] += jnp.dot(fuse, wd_ref[...], preferred_element_type=jnp.float32)

    @pl.when(k == pl.num_programs(1) - 1)
    def _():
        o_ref[...] = (acc_ref[...] + bd_ref[...]).astype(o_ref.dtype)


# ------------------------------------------------------------------ param packing


def prepare_usta_mlp_params(wg, bg, wu, bu, wd, bd, *, compute_dtype=jnp.bfloat16,
                            th_target=512):
    """Pad/fuse weights ONCE (not per call).

    wg/wu: (E, H); bg/bu: (1, H) or (H,); wd: (H, E); bd: (1, E) or (E,).
    Weights are stored transposed vs. torch nn.Linear, i.e. (in_features, out_features),
    so the kernel does plain row-major matmuls on the MXU.
    """
    E, H = wg.shape
    E_pad = _round_up(E, _LANE_ALIGN)
    H_pad = _round_up(H, _LANE_ALIGN)
    th = _pick_th(H_pad, th_target)
    n_h = H_pad // th
    cd = compute_dtype

    # Zero padding is math-neutral: gelu(0) * 0 = 0 and padded wd rows/cols are zero.
    wg_p = jnp.zeros((E_pad, H_pad), cd).at[:E, :H].set(wg.astype(cd))
    wu_p = jnp.zeros((E_pad, H_pad), cd).at[:E, :H].set(wu.astype(cd))
    # Interleave per H-chunk: columns [k*2*th : (k+1)*2*th] = [gate_k | up_k].
    wgu = jnp.zeros((E_pad, n_h, 2, th), cd)
    wgu = wgu.at[:, :, 0, :].set(wg_p.reshape(E_pad, n_h, th))
    wgu = wgu.at[:, :, 1, :].set(wu_p.reshape(E_pad, n_h, th))
    wgu = wgu.reshape(E_pad, 2 * H_pad)

    bg_p = jnp.zeros((H_pad,), jnp.float32).at[:H].set(
        bg.reshape(-1).astype(jnp.float32))
    bu_p = jnp.zeros((H_pad,), jnp.float32).at[:H].set(
        bu.reshape(-1).astype(jnp.float32))
    bgu = jnp.zeros((n_h, 2, th), jnp.float32)
    bgu = bgu.at[:, 0, :].set(bg_p.reshape(n_h, th))
    bgu = bgu.at[:, 1, :].set(bu_p.reshape(n_h, th))
    bgu = bgu.reshape(1, 2 * H_pad)

    wd_p = jnp.zeros((H_pad, E_pad), cd).at[:H, :E].set(wd.astype(cd))
    bd_p = jnp.zeros((1, E_pad), jnp.float32).at[:, :E].set(
        bd.reshape(1, -1).astype(jnp.float32))

    return {
        "wgu": wgu, "bgu": bgu, "wd": wd_p, "bd": bd_p,
        "E": E, "H": H, "E_pad": E_pad, "H_pad": H_pad, "th": th,
        "compute_dtype": cd,
    }


# ----------------------------------------------------------------------- wrapper


def usta_mlp(x2d, params, *, tm_target=256, out_dtype=None):
    """x2d: (M, E).  params: output of prepare_usta_mlp_params."""
    M, E = x2d.shape
    assert E == params["E"], "embedding dim mismatch with prepared params"
    E_pad, H_pad, th = params["E_pad"], params["H_pad"], params["th"]
    cd = params["compute_dtype"]
    out_dtype = x2d.dtype if out_dtype is None else out_dtype

    tm = _pick_tm(M, tm_target)
    M_pad = _round_up(M, tm)

    xc = x2d.astype(cd)
    padded = (M_pad, E_pad) != (M, E)
    if padded:
        xp = jnp.zeros((M_pad, E_pad), cd).at[:M, :E].set(xc)
    else:
        xp = xc

    n_m, n_h = M_pad // tm, H_pad // th
    wgu, bgu, wd_p, bd_p = params["wgu"], params["bgu"], params["wd"], params["bd"]

    bf = jnp.dtype(cd).itemsize
    ob = jnp.dtype(out_dtype).itemsize

    flops = 2 * M_pad * E_pad * (2 * H_pad) + 2 * M_pad * H_pad * E_pad
    bytes_accessed = (
        M_pad * E_pad * bf + wgu.size * bf + wd_p.size * bf
        + (bgu.size + bd_p.size) * 4 + M_pad * E_pad * ob
    )

    # Per-buffer tile footprint (inputs double-buffered by the pipeline) + temps.
    footprint = (
        2 * tm * E_pad * bf                      # x tile
        + 2 * E_pad * (2 * th) * bf              # fused gate|up weight tile
        + 2 * th * E_pad * bf                    # down weight tile
        + 2 * (2 * th) * 4 + 2 * E_pad * 4       # bias tiles
        + 2 * tm * E_pad * ob                    # out tile
        + tm * E_pad * 4                         # f32 accumulator scratch
        + 3 * tm * (2 * th) * 4                  # gu / gate*up / fuse f32 temporaries
    )

    out_pad = pl.pallas_call(
        usta_mlp_kernel,
        out_shape=jax.ShapeDtypeStruct((M_pad, E_pad), out_dtype),
        grid=(n_m, n_h),
        in_specs=[
            pl.BlockSpec((tm, E_pad), lambda i, k: (i, 0)),        # x tile (constant over k)
            pl.BlockSpec((E_pad, 2 * th), lambda i, k: (0, k)),    # fused gate|up chunk
            pl.BlockSpec((1, 2 * th), lambda i, k: (0, k)),        # fused gate|up bias chunk
            pl.BlockSpec((th, E_pad), lambda i, k: (k, 0)),        # down-proj chunk
            pl.BlockSpec((1, E_pad), lambda i, k: (0, 0)),         # down-proj bias
        ],
        out_specs=pl.BlockSpec((tm, E_pad), lambda i, k: (i, 0)),
        scratch_shapes=[pltpu.VMEM((tm, E_pad), jnp.float32)],
        compiler_params=pltpu.CompilerParams(
            dimension_semantics=("parallel", "arbitrary"),
            vmem_limit_bytes=_vmem_limit(footprint),
        ),
        cost_estimate=pl.CostEstimate(
            flops=flops,
            transcendentals=M_pad * H_pad,
            bytes_accessed=bytes_accessed,
        ),
    )(xp, wgu, bgu, wd_p, bd_p)

    if padded:
        return out_pad[:M, :E]
    return out_pad


# --------------------------------------------------------------------- reference


def usta_mlp_ref(x2d, wg, bg, wu, bu, wd, bd, compute_dtype=jnp.bfloat16):
    """Plain-JAX reference with the same bf16-operand / f32-accumulate policy."""
    xc = x2d.astype(compute_dtype)
    gate = jnp.dot(xc, wg.astype(compute_dtype), preferred_element_type=jnp.float32) + bg
    gate = _gelu_tanh(gate)
    up = jnp.dot(xc, wu.astype(compute_dtype), preferred_element_type=jnp.float32) + bu
    fuse = (gate * up).astype(compute_dtype)
    out = jnp.dot(fuse, wd.astype(compute_dtype), preferred_element_type=jnp.float32) + bd
    return out.astype(x2d.dtype)


if __name__ == "__main__":
    batch, seq, embedding_dim, hidden_dim = 2, 8, 32, 64

    key = jax.random.PRNGKey(0)
    kx, kwg, kbg, kwu, kbu, kwd, kbd = jax.random.split(key, 7)

    x = jax.random.normal(kx, (batch, seq, embedding_dim), dtype=jnp.float32)

    # Parameters match nn.Linear semantics; stored transposed for the kernel: (in, out).
    wg = jax.random.normal(kwg, (embedding_dim, hidden_dim), dtype=jnp.float32) * 0.05
    bg = jax.random.normal(kbg, (1, hidden_dim), dtype=jnp.float32) * 0.05
    wu = jax.random.normal(kwu, (embedding_dim, hidden_dim), dtype=jnp.float32) * 0.05
    bu = jax.random.normal(kbu, (1, hidden_dim), dtype=jnp.float32) * 0.05
    wd = jax.random.normal(kwd, (hidden_dim, embedding_dim), dtype=jnp.float32) * 0.05
    bd = jax.random.normal(kbd, (1, embedding_dim), dtype=jnp.float32) * 0.05

    # One-time parameter packing (padding + gate|up fusion), then the per-call kernel.
    params = prepare_usta_mlp_params(wg, bg, wu, bu, wd, bd)

    x2d = x.reshape(batch * seq, embedding_dim)
    out2d = usta_mlp(x2d, params)
    out = out2d.reshape(batch, seq, embedding_dim)
    jax.block_until_ready(out)

    # Sanity check against a plain-JAX reference applying the same dtype policy.
    ref = usta_mlp_ref(x2d, wg, bg, wu, bu, wd, bd).reshape(batch, seq, embedding_dim)
    assert jnp.allclose(out, ref, atol=2e-3, rtol=2e-3), "mismatch vs reference"

    print("KERNEL_OK")
</pallas_src>

<mosaic_0001>
module attributes {stable_mosaic.version = 11 : i64} {
  func.func @usta_mlp_kernel(%arg0: i32, %arg1: i32, %arg2: memref<8x256xbf16, #tpu.memory_space<vmem>>, %arg3: memref<256x512xbf16, #tpu.memory_space<vmem>>, %arg4: memref<1x512xf32, #tpu.memory_space<vmem>>, %arg5: memref<256x256xbf16, #tpu.memory_space<vmem>>, %arg6: memref<1x256xf32, #tpu.memory_space<vmem>>, %arg7: memref<8x256xf32, #tpu.memory_space<vmem>>, %arg8: memref<8x256xf32, #tpu.memory_space<vmem>>) attributes {dimension_semantics = [#tpu.dimension_semantics<parallel>, #tpu.dimension_semantics<arbitrary>], iteration_bounds = array<i64: 2, 1>, scalar_prefetch = 0 : i64, scratch_operands = 1 : i64, tpu.core_type = #tpu.core_type<tc>, window_params = [{transform_indices = @transform_0, window_bounds = array<i64: 8, 256>}, {transform_indices = @transform_1, window_bounds = array<i64: 256, 512>}, {transform_indices = @transform_2, window_bounds = array<i64: 1, 512>}, {transform_indices = @transform_3, window_bounds = array<i64: 256, 256>}, {pipeline_mode = #tpu.pipeline_mode<synchronous>, transform_indices = @transform_4, window_bounds = array<i64: 1, 256>}, {transform_indices = @transform_5, window_bounds = array<i64: 8, 256>}]} {
    %c0_i32 = arith.constant 0 : i32
    %0 = arith.cmpi eq, %arg1, %c0_i32 : i32
    %1 = arith.extui %0 : i1 to i32
    %c0_i32_0 = arith.constant 0 : i32
    %2 = arith.cmpi ne, %1, %c0_i32_0 : i32
    scf.if %2 {
      %cst_19 = arith.constant 0.000000e+00 : f32
      %35 = vector.broadcast %cst_19 : f32 to vector<8x256xf32>
      %c0_20 = arith.constant 0 : index
      %c0_21 = arith.constant 0 : index
      %36 = vector.load %arg8[%c0_20, %c0_21] : memref<8x256xf32, #tpu.memory_space<vmem>>, vector<8x256xf32>
      tpu.vector_store %arg8[%c0_20, %c0_21], %35 {strides = array<i32>} : memref<8x256xf32, #tpu.memory_space<vmem>>, vector<8x256xf32>,
    } else {
    }
    %c0 = arith.constant 0 : index
    %c0_1 = arith.constant 0 : index
    %3 = vector.load %arg2[%c0, %c0_1] : memref<8x256xbf16, #tpu.memory_space<vmem>>, vector<8x256xbf16>
    %c0_2 = arith.constant 0 : index
    %c0_3 = arith.constant 0 : index
    %4 = vector.load %arg3[%c0_2, %c0_3] : memref<256x512xbf16, #tpu.memory_space<vmem>>, vector<256x512xbf16>
    %cst = arith.constant dense<0.000000e+00> : vector<8x512xf32>
    %5 = tpu.matmul %3, %4, %cst {dimension_numbers = #tpu.dot_dimension_numbers<[1], [0], [0], [1], [0, 0, 1, 1], [], []>} : vector<8x256xbf16>, vector<256x512xbf16>, vector<8x512xf32> -> vector<8x512xf32>
    %c0_4 = arith.constant 0 : index
    %c0_5 = arith.constant 0 : index
    %6 = vector.load %arg4[%c0_4, %c0_5] : memref<1x512xf32, #tpu.memory_space<vmem>>, vector<1x512xf32>
    %7 = vector.broadcast %6 : vector<1x512xf32> to vector<8x512xf32>
    %8 = arith.addf %5, %7 : vector<8x512xf32>
    %9 = vector.extract_strided_slice %8 {offsets = [0, 0], sizes = [8, 256], strides = [1, 1]} : vector<8x512xf32> to vector<8x256xf32>
    %cst_6 = arith.constant 0.636619746 : f32
    %10 = math.sqrt %cst_6 : f32
    %cst_7 = arith.constant 5.000000e-01 : f32
    %11 = vector.broadcast %cst_7 : f32 to vector<8x256xf32>
    %12 = arith.mulf %11, %9 : vector<8x256xf32>
    %cst_8 = arith.constant 4.471500e-02 : f32
    %13 = vector.broadcast %cst_8 : f32 to vector<8x256xf32>
    %14 = arith.mulf %13, %9 : vector<8x256xf32>
    %15 = arith.mulf %14, %9 : vector<8x256xf32>
    %16 = arith.mulf %15, %9 : vector<8x256xf32>
    %17 = arith.addf %9, %16 : vector<8x256xf32>
    %18 = vector.broadcast %10 : f32 to vector<8x256xf32>
    %19 = arith.mulf %18, %17 : vector<8x256xf32>
    %20 = math.tanh %19 : vector<8x256xf32>
    %cst_9 = arith.constant 1.000000e+00 : f32
    %21 = vector.broadcast %cst_9 : f32 to vector<8x256xf32>
    %22 = arith.addf %21, %20 : vector<8x256xf32>
    %23 = arith.mulf %12, %22 : vector<8x256xf32>
    %24 = vector.extract_strided_slice %8 {offsets = [0, 256], sizes = [8, 256], strides = [1, 1]} : vector<8x512xf32> to vector<8x256xf32>
    %25 = arith.mulf %23, %24 : vector<8x256xf32>
    %26 = arith.truncf %25 : vector<8x256xf32> to vector<8x256xbf16>
    %c0_10 = arith.constant 0 : index
    %c0_11 = arith.constant 0 : index
    %27 = vector.load %arg8[%c0_10, %c0_11] : memref<8x256xf32, #tpu.memory_space<vmem>>, vector<8x256xf32>
    %c0_12 = arith.constant 0 : index
    %c0_13 = arith.constant 0 : index
    %28 = vector.load %arg5[%c0_12, %c0_13] : memref<256x256xbf16, #tpu.memory_space<vmem>>, vector<256x256xbf16>
    %cst_14 = arith.constant dense<0.000000e+00> : vector<8x256xf32>
    %29 = tpu.matmul %26, %28, %cst_14 {dimension_numbers = #tpu.dot_dimension_numbers<[1], [0], [0], [1], [0, 0, 1, 1], [], []>} : vector<8x256xbf16>, vector<256x256xbf16>, vector<8x256xf32> -> vector<8x256xf32>
    %30 = arith.addf %27, %29 : vector<8x256xf32>
    %c0_15 = arith.constant 0 : index
    %c0_16 = arith.constant 0 : index
    %31 = vector.load %arg8[%c0_15, %c0_16] : memref<8x256xf32, #tpu.memory_space<vmem>>, vector<8x256xf32>
    tpu.vector_store %arg8[%c0_15, %c0_16], %30 {strides = array<i32>} : memref<8x256xf32, #tpu.memory_space<vmem>>, vector<8x256xf32>,
    %c0_i32_17 = arith.constant 0 : i32
    %32 = arith.cmpi eq, %arg1, %c0_i32_17 : i32
    %33 = arith.extui %32 : i1 to i32
    %c0_i32_18 = arith.constant 0 : i32
    %34 = arith.cmpi ne, %33, %c0_i32_18 : i32
    scf.if %34 {
      %c0_19 = arith.constant 0 : index
      %c0_20 = arith.constant 0 : index
      %35 = vector.load %arg8[%c0_19, %c0_20] : memref<8x256xf32, #tpu.memory_space<vmem>>, vector<8x256xf32>
      %c0_21 = arith.constant 0 : index
      %c0_22 = arith.constant 0 : index
      %36 = vector.load %arg6[%c0_21, %c0_22] : memref<1x256xf32, #tpu.memory_space<vmem>>, vector<1x256xf32>
      %37 = vector.broadcast %36 : vector<1x256xf32> to vector<8x256xf32>
      %38 = arith.addf %35, %37 : vector<8x256xf32>
      %c0_23 = arith.constant 0 : index
      %c0_24 = arith.constant 0 : index
      %39 = vector.load %arg7[%c0_23, %c0_24] : memref<8x256xf32, #tpu.memory_space<vmem>>, vector<8x256xf32>
      tpu.vector_store %arg7[%c0_23, %c0_24], %38 {strides = array<i32>} : memref<8x256xf32, #tpu.memory_space<vmem>>, vector<8x256xf32>,
    } else {
    }
    return
  }
  func.func @transform_0(%arg0: i32, %arg1: i32) -> (i32, i32) {
    %c0_i32 = arith.constant 0 : i32
    %c0_i32_0 = arith.constant 0 : i32
    return %arg0, %c0_i32 : i32, i32
  }
  func.func @transform_1(%arg0: i32, %arg1: i32) -> (i32, i32) {
    %c0_i32 = arith.constant 0 : i32
    %c0_i32_0 = arith.constant 0 : i32
    return %c0_i32, %arg1 : i32, i32
  }
  func.func @transform_2(%arg0: i32, %arg1: i32) -> (i32, i32) {
    %c0_i32 = arith.constant 0 : i32
    %c0_i32_0 = arith.constant 0 : i32
    return %c0_i32, %arg1 : i32, i32
  }
  func.func @transform_3(%arg0: i32, %arg1: i32) -> (i32, i32) {
    %c0_i32 = arith.constant 0 : i32
    %c0_i32_0 = arith.constant 0 : i32
    return %arg1, %c0_i32 : i32, i32
  }
  func.func @transform_4(%arg0: i32, %arg1: i32) -> (i32, i32) {
    %c0_i32 = arith.constant 0 : i32
    %c0_i32_0 = arith.constant 0 : i32
    %c0_i32_1 = arith.constant 0 : i32
    return %c0_i32, %c0_i32_0 : i32, i32
  }
  func.func @transform_5(%arg0: i32, %arg1: i32) -> (i32, i32) {
    %c0_i32 = arith.constant 0 : i32
    %c0_i32_0 = arith.constant 0 : i32
    return %arg0, %c0_i32 : i32, i32
  }
}

</mosaic_0001>

<bundles_post_ra>
// kernel: tpu_custom_call.1
= control target key start
LH: loop header
LB: loop body
LE: loop exit
PB: predicated region body
PF: predicated region fallthrough
CT: control target
= control target key end

     0   :  { %10 = vsyncpa [#allocation4], 0  ;;  %s2304_s0 = inlined_call_operand.hbm [shape: bf16[16,256], index: 0, kind: input, shape index: {}]   ;;  %s2305_s1 = inlined_call_operand.hbm [shape: bf16[256,512], index: 1, kind: input, shape index: {}]   ;;  %s2306_s2 = inlined_call_operand.hbm [shape: f32[1,512], index: 2, kind: input, shape index: {}]   ;;  %s2307_s3 = inlined_call_operand.hbm [shape: bf16[256,256], index: 3, kind: input, shape index: {}]   ;;  %s2308_s4 = inlined_call_operand.vmem [shape: f32[1,256], index: 4, kind: input, shape index: {}]   ;;  %s2309_s5 = inlined_call_operand.hbm [shape: f32[16,256], index: 5, kind: output, shape index: {}]  }
   0x1   :  { %12 = vsyncpa [#allocation4 + $0x1], 0 }
   0x2   :  { %13 = vsyncpa [#allocation7], 0 }
   0x3   :  { %14 = vsyncpa [#allocation10], 0 }
   0x4   :  { %15 = vsyncpa [#allocation5], 0 }
   0x5   :  { %17 = vsyncpa [#allocation5 + $0x1], 0  ;;  %s2112_s18 = smov 0   ;;  %s2114_s19 = smov 0  }
   0x6   :  { %s2116_s20 = smov 0   ;;  %s2118_s21 = smov 0  }
   0x7   :  { %s2120_s22 = smov 0   ;;  %s2122_s23 = smov 0  }
   0x8 LB: > { %s1259_s24 = sadd.s32 4294967295, %s2073_s23   ;;  %p1261_p0 = scmp.ge.s32.totalorder %s2073_s23, 1  ;;  %s2073_s23 = sphi %s2122_s23, %s23_s23   ;;  %s2069_s22 = sphi %s2120_s22, %s2321_s22   ;;  %s2065_s21 = sphi %s2118_s21, %s2320_s21   ;;  %s2061_s20 = sphi %s2116_s20, %s2319_s20   ;;  %s2057_s19 = sphi %s2114_s19, %s2318_s19   ;;  %s2053_s18 = sphi %s2112_s18, %s2317_s18  }
   0x9   : > { %p2146_p1 = scmp.eq.s32.totalorder %s1259_s24, 0  ;;  %p191_p2 = scmp.lt.s32.totalorder %s2073_s23, 3 }
   0xa   : > { %s205_s28 = sshll.u32 %s2305_s1, 4  ;;  %s2075_s30 = smov [#allocation6]   ;;  %s206_s28 = int_to_ptr.hbm [resolvable:$true] %s205_s28 }
   0xb   : > { %p2154_p3 = pnand %p1261_p0, %p191_p2  ;;  %s207_s6 = sshll.u32 %s2075_s30, 4  ;;  %s208_s6 = int_to_ptr.vmem [resolvable:$true] %s207_s6 }
   0xc   : > { %p1265_p6 = scmp.ge.s32.totalorder %s2073_s23, 2  ;;  %s222_s10 = sshll.u32 %s2306_s2, 4  ;;  %s223_s10 = int_to_ptr.hbm [resolvable:$true] %s222_s10 }
   0xd   : > { %p1778_p4 = pneg %p2154_p3  ;;  %s2076_s11 = smov 256  }
   0xe   : > { %s2077_s12 = smov 16   ;;  %s2078_s13 = smov [#allocation8]  }
   0xf   : > { %p2162_p5 = pnand %p1778_p4, %p2146_p1  ;;  %s224_s14 = sshll.u32 %s2078_s13, 4  ;;  %s225_s14 = int_to_ptr.vmem [resolvable:$true] %s224_s14 }
  0x10   : > { %s237_s17 = sshll.u32 %s2307_s3, 4  ;;  %s2079_s26 = smov [#allocation9]   ;;  %s238_s17 = int_to_ptr.hbm [resolvable:$true] %s237_s17 }
  0x11   : > { %1781 = dma.hbm_to_vmem [thread:$0]  (!%p2162_p5), %s206_s28, 8192, %s208_s6, [#allocation7], %s2076_s11, %s2076_s11, %s2077_s12  }
  0x12   : > { %1784 = dma.hbm_to_vmem [thread:$0]  (!%p2162_p5), %s223_s10, 64, %s225_s14, [#allocation7]  }
  0x13   : > { %s239_s27 = sshll.u32 %s2079_s26, 4  ;;  %s2080_s28 = smov 128   ;;  %s240_s27 = int_to_ptr.vmem [resolvable:$true] %s239_s27 }
  0x14   : > { %s2081_s30 = smov 8   ;;  %s1260_s6 = sadd.s32 4294967294, %s2073_s23  }
  0x15   : > { %1787 = dma.hbm_to_vmem [thread:$0]  (!%p2162_p5), %s238_s17, 4096, %s240_s27, [#allocation10], %s2080_s28, %s2080_s28, %s2081_s30  }
  0x16   : > { %s35_s8 = sadd.s32 1, %s2069_s22  ;;  %s42_s9 = sadd.s32 1, %s2061_s20 }
  0x17   : > { %p37_p7 = scmp.ge.s32.totalorder %s35_s8, 2  ;;  %p49_p8 = scmp.ne.s32.totalorder %s2061_s20, %s2057_s19 }
  0x18   : > { %p50_p9 = scmp.eq.s32.totalorder %s2073_s23, 0  ;;  %p55_p10 = scmp.ne.s32.totalorder %s2057_s19, %s2053_s18 }
  0x19   : > { %s2323_s8 = smov (%p37_p7, %s35_s8), 0  ;;  %p178_p13 = scmp.eq.s32.totalorder %s1259_s24, 1 }
  0x1a   : > { %p2189_p11 = por %p50_p9, %p49_p8  ;;  %p2195_p12 = por %p2146_p1, %p55_p10 }
  0x1b   : > { %s39_s11 = ssub.s32 %s2069_s22, %s2323_s8  ;;  %p184_p2 = scmp.eq.s32.totalorder %s1260_s6, 1 }
  0x1c   : > { %p40_p0 = scmp.eq.s32.totalorder %s39_s11, 0  ;;  %p2203_p4 = por %p178_p13, %p49_p8 }
  0x1d   : > { %p1799_p5 = scmp.lt.s32.totalorder %s2073_s23, 2  ;;  %p2211_p7 = por %p184_p2, %p55_p10 }
  0x1e   : > { %s2209_s13 = scalar_select %p40_p0, %s2061_s20, %s42_s9  }
  0x1f   : > { %s256_s15 = sand.u32 1, %s2061_s20   ;;  %s1664_s17 = sshll.u32 %s2069_s22, 3 }
  0x20   : > { %s1266_s16 = sshll.u32 %s256_s15, 3  ;;  %s265_s24 = scalar_lea.hbm %s2304_s0, %s1664_s17 }
  0x21   : > { %s260_s28 = scalar_lea.vmem [#allocation3], %s1266_s16  ;;  %s267_s6 = sshll.u32 %s265_s24, 4  ;;  %s268_s6 = int_to_ptr.hbm [resolvable:$true] %s267_s6 }
  0x22   : > { %s269_s30 = sshll.u32 %s260_s28, 4  ;;  %p1789_p8 = pnand %p1799_p5, %p2189_p11  ;;  %s270_s30 = int_to_ptr.vmem [resolvable:$true] %s269_s30 }
  0x23   : > { %s257_s9 = scalar_lea.sflag [#allocation4], %s256_s15  ;;  %278 = sbr.rel (%p2154_p3) target bundleno = 393 (0x189), region = 40 }
  0x24   : > { %1791 = dma.hbm_to_vmem [thread:$0]  (!%p1789_p8), %s268_s6, 128, %s270_s30, %s257_s9  }
  0x25   : > { %s2225_s11 = sand.u32 (!%p2154_p3), 1, %s2057_s19  }
  0x26   : > { %s1270_s26 = sshll.u32 (!%p2154_p3), %s2225_s11, 3  ;;  %s281_s17 = scalar_lea.sflag (!%p2154_p3), [#allocation4], %s2225_s11 }
  0x27   : > { %s2229_s16 = scalar_lea.vmem (!%p2154_p3), [#allocation3], %s1270_s26 }
  0x28   : > { %2036 = dma.done.wait (%p2195_p12), %s281_s17, 128  }
  0x29   : > { %2038 = vsyncadd (%p2195_p12), %s281_s17, 4294967168 }
  0x2a   : > { %2040 = dma.done.wait (%p2146_p1), [#allocation7], 8256  }
  0x2b   : > { %2042 = vsyncadd (%p2146_p1), [#allocation7], 4294959040 }
  0x2c   : > { %2044 = dma.done.wait (%p2146_p1), [#allocation10], 4096  }
  0x2d   : > { %2046 = vsyncadd (%p2146_p1), [#allocation10], 4294963200  ;;  %v1389_v0 = vld [vmem:[#allocation6 + $0xe0] sm:$0xf]  ;;  %v1695_v1 = vld [vmem:[#allocation6 + $0xec] sm:$0xf0] }
  0x2e   : > { %v1517_v2 = vld [vmem:[#allocation6 + $0x1e0] sm:$0xf]  ;;  %v1390_v3 = vor.u32 %v1695_v1, %v1389_v0  ;;  %v1727_v4 = vld [vmem:[#allocation6 + $0x1ec] sm:$0xf0]  ;;  %v1693_v5 = vld [vmem:[#allocation6 + $0xe4] sm:$0xf] }
  0x2f   : > { %v1391_v6 = vld [vmem:[#allocation6 + $0xf0] sm:$0xf0]  ;;  %v1518_v7 = vor.u32 %v1727_v4, %v1517_v2  ;;  %v1725_v9 = vld [vmem:[#allocation6 + $0x1e4] sm:$0xf]  ;;  %v1373_v11 = vld [vmem:[#allocation6 + $0xc0] sm:$0xf] }
  0x30   : > { %v1394_v8 = vor.u32 %v1693_v5, %v1391_v6  ;;  %v1519_v10 = vld [vmem:[#allocation6 + $0x1f0] sm:$0xf0]  ;;  %738 = vmatpush.bf16.msra.mxu0 %v1390_v3  ;;  %v1691_v13 = vld [vmem:[#allocation6 + $0xcc] sm:$0xf0]  ;;  %v1501_v14 = vld [vmem:[#allocation6 + $0x1c0] sm:$0xf] }
  0x31   : > { %v1522_v12 = vor.u32 %v1725_v9, %v1519_v10  ;;  %v1723_v15 = vld [vmem:[#allocation6 + $0x1cc] sm:$0xf0]  ;;  %751 = vmatpush.bf16.msra.mxu1 %v1518_v7  ;;  %v1374_v16 = vor.u32 %v1691_v13, %v1373_v11  ;;  %v1689_v18 = vld [vmem:[#allocation6 + $0xc4] sm:$0xf]  ;;  %v1375_v19 = vld [vmem:[#allocation6 + $0xd0] sm:$0xf0] }
  0x32   : > { %764 = vmatpush.bf16.msra.mxu2 %v1394_v8  ;;  %v1502_v17 = vor.u32 %v1723_v15, %v1501_v14  ;;  %v1721_v20 = vld [vmem:[#allocation6 + $0x1c4] sm:$0xf]  ;;  %v1378_v21 = vor.u32 %v1689_v18, %v1375_v19  ;;  %v1503_v22 = vld [vmem:[#allocation6 + $0x1d0] sm:$0xf0]  ;;  %v1357_v23 = vld [vmem:[#allocation6 + $0xa0] sm:$0xf] }
  0x33   : > { %777 = vmatpush.bf16.msra.mxu3 %v1522_v12  ;;  %v1687_v24 = vld [vmem:[#allocation6 + $0xac] sm:$0xf0]  ;;  %v1506_v25 = vor.u32 %v1721_v20, %v1503_v22  ;;  %v1485_v26 = vld [vmem:[#allocation6 + $0x1a0] sm:$0xf]  ;;  %v1685_v28 = vld [vmem:[#allocation6 + $0xa4] sm:$0xf] }
  0x34   : > { %v1719_v27 = vld [vmem:[#allocation6 + $0x1ac] sm:$0xf0]  ;;  %739 = vmatpush.bf16.msra.mxu0 %v1374_v16  ;;  %v1358_v29 = vor.u32 %v1687_v24, %v1357_v23  ;;  %v1359_v30 = vld [vmem:[#allocation6 + $0xb0] sm:$0xf0]  ;;  %v1717_v31 = vld [vmem:[#allocation6 + $0x1a4] sm:$0xf] }
  0x35   : > { %v1487_v32 = vld [vmem:[#allocation6 + $0x1b0] sm:$0xf0]  ;;  %752 = vmatpush.bf16.msra.mxu1 %v1502_v17  ;;  %v1486_v33 = vor.u32 %v1719_v27, %v1485_v26  ;;  %v1362_v34 = vor.u32 %v1685_v28, %v1359_v30  ;;  %v1341_v35 = vld [vmem:[#allocation6 + $0x80] sm:$0xf]  ;;  %v1683_v36 = vld [vmem:[#allocation6 + $0x8c] sm:$0xf0] }
  0x36   : > { %765 = vmatpush.bf16.msra.mxu2 %v1378_v21  ;;  %v1469_v37 = vld [vmem:[#allocation6 + $0x180] sm:$0xf]  ;;  %v1490_v38 = vor.u32 %v1717_v31, %v1487_v32  ;;  %v1715_v39 = vld [vmem:[#allocation6 + $0x18c] sm:$0xf0]  ;;  %v1681_v40 = vld [vmem:[#allocation6 + $0x84] sm:$0xf]  ;;  %v1342_v44 = vor.u32 %v1683_v36, %v1341_v35 }
  0x37   : > { %778 = vmatpush.bf16.msra.mxu3 %v1506_v25  ;;  %v1343_v41 = vld [vmem:[#allocation6 + $0x90] sm:$0xf0]  ;;  %v1713_v42 = vld [vmem:[#allocation6 + $0x184] sm:$0xf]  ;;  %v1470_v45 = vor.u32 %v1715_v39, %v1469_v37  ;;  %v1325_v47 = vld [vmem:[#allocation6 + $0x60] sm:$0xf] }
  0x38   : > { %v1471_v43 = vld [vmem:[#allocation6 + $0x190] sm:$0xf0]  ;;  %740 = vmatpush.bf16.msra.mxu0 %v1358_v29  ;;  %v1346_v46 = vor.u32 %v1681_v40, %v1343_v41  ;;  %v1679_v48 = vld [vmem:[#allocation6 + $0x6c] sm:$0xf0]  ;;  %v1453_v49 = vld [vmem:[#allocation6 + $0x160] sm:$0xf] }
  0x39   : > { %753 = vmatpush.bf16.msra.mxu1 %v1486_v33  ;;  %v1474_v50 = vor.u32 %v1713_v42, %v1471_v43  ;;  %v1711_v51 = vld [vmem:[#allocation6 + $0x16c] sm:$0xf0]  ;;  %v1677_v52 = vld [vmem:[#allocation6 + $0x64] sm:$0xf]  ;;  %v1327_v53 = vld [vmem:[#allocation6 + $0x70] sm:$0xf0]  ;;  %v1326_v56 = vor.u32 %v1679_v48, %v1325_v47 }
  0x3a   : > { %766 = vmatpush.bf16.msra.mxu2 %v1362_v34  ;;  %v1709_v54 = vld [vmem:[#allocation6 + $0x164] sm:$0xf]  ;;  %v1455_v55 = vld [vmem:[#allocation6 + $0x170] sm:$0xf0]  ;;  %v1454_v57 = vor.u32 %v1711_v51, %v1453_v49  ;;  %v1330_v58 = vor.u32 %v1677_v52, %v1327_v53  ;;  %v1309_v59 = vld [vmem:[#allocation6 + $0x40] sm:$0xf] }
  0x3b   : > { %779 = vmatpush.bf16.msra.mxu3 %v1490_v38  ;;  %v1675_v60 = vld [vmem:[#allocation6 + $0x4c] sm:$0xf0]  ;;  %v1437_v61 = vld [vmem:[#allocation6 + $0x140] sm:$0xf]  ;;  %v1458_v62 = vor.u32 %v1709_v54, %v1455_v55  ;;  %v1673_v0 = vld [vmem:[#allocation6 + $0x44] sm:$0xf] }
  0x3c   : > { %741 = vmatpush.bf16.msra.mxu0 %v1342_v44  ;;  %v1707_v63 = vld [vmem:[#allocation6 + $0x14c] sm:$0xf0]  ;;  %v1311_v1 = vld [vmem:[#allocation6 + $0x50] sm:$0xf0]  ;;  %v1705_v2 = vld [vmem:[#allocation6 + $0x144] sm:$0xf]  ;;  %v1310_v4 = vor.u32 %v1675_v60, %v1309_v59 }
  0x3d   : > { %754 = vmatpush.bf16.msra.mxu1 %v1470_v45  ;;  %v1439_v3 = vld [vmem:[#allocation6 + $0x150] sm:$0xf0]  ;;  %v1438_v5 = vor.u32 %v1707_v63, %v1437_v61  ;;  %v1314_v6 = vor.u32 %v1673_v0, %v1311_v1  ;;  %v1293_v7 = vld [vmem:[#allocation6 + $0x20] sm:$0xf]  ;;  %v1671_v8 = vld [vmem:[#allocation6 + $0x2c] sm:$0xf0] }
  0x3e   : > { %767 = vmatpush.bf16.msra.mxu2 %v1346_v46  ;;  %v1421_v9 = vld [vmem:[#allocation6 + $0x120] sm:$0xf]  ;;  %v1442_v10 = vor.u32 %v1705_v2, %v1439_v3  ;;  %v1703_v11 = vld [vmem:[#allocation6 + $0x12c] sm:$0xf0]  ;;  %v1669_v12 = vld [vmem:[#allocation6 + $0x24] sm:$0xf]  ;;  %v1294_v16 = vor.u32 %v1671_v8, %v1293_v7 }
  0x3f   : > { %780 = vmatpush.bf16.msra.mxu3 %v1474_v50  ;;  %v1295_v13 = vld [vmem:[#allocation6 + $0x30] sm:$0xf0]  ;;  %v1701_v14 = vld [vmem:[#allocation6 + $0x124] sm:$0xf]  ;;  %v1277_v17 = vld [vmem:[#allocation6] sm:$0xf]  ;;  %v1422_v20 = vor.u32 %v1703_v11, %v1421_v9 }
  0x40   : > { %742 = vmatpush.bf16.msra.mxu0 %v1326_v56  ;;  %v1423_v15 = vld [vmem:[#allocation6 + $0x130] sm:$0xf0]  ;;  %v1667_v18 = vld [vmem:[#allocation6 + $0xc] sm:$0xf0]  ;;  %v1405_v19 = vld [vmem:[#allocation6 + $0x100] sm:$0xf]  ;;  %v1298_v21 = vor.u32 %v1669_v12, %v1295_v13 }
  0x41   : > { %755 = vmatpush.bf16.msra.mxu1 %v1454_v57  ;;  %v1699_v22 = vld [vmem:[#allocation6 + $0x10c] sm:$0xf0]  ;;  %v1665_v23 = vld [vmem:[#allocation6 + $0x4] sm:$0xf]  ;;  %v1426_v25 = vor.u32 %v1701_v14, %v1423_v15  ;;  %v1279_v26 = vld [vmem:[#allocation6 + $0x10] sm:$0xf0]  ;;  %v1278_v32 = vor.u32 %v1667_v18, %v1277_v17 }
  0x42   : > { %768 = vmatpush.bf16.msra.mxu2 %v1330_v58  ;;  %v336_v24 = vld [vmem:[%s2229_s16] sm:$0xff]  ;;  %v1697_v27 = vld [vmem:[#allocation6 + $0x104] sm:$0xf]  ;;  %v1397_v29 = vld [vmem:[#allocation6 + $0xe8] sm:$0xf]  ;;  %v1406_v37 = vor.u32 %v1699_v22, %v1405_v19  ;;  %v1282_v38 = vor.u32 %v1665_v23, %v1279_v26  ;;  %s1274_s10 = sshll.u32 %s2225_s11, 4 }
  0x43   : > { %781 = vmatpush.bf16.msra.mxu3 %v1458_v62  ;;  %v1407_v28 = vld [vmem:[#allocation6 + $0x110] sm:$0xf0]  ;;  %v1696_v30 = vld [vmem:[#allocation6 + $0xf4] sm:$0xf0]  ;;  %v1525_v31 = vld [vmem:[#allocation6 + $0x1e8] sm:$0xf]  ;;  %v412_v36 = vunpack.c.l.b16 %v336_v24  ;;  %v413_v41 = vunpack.c.h.b16 %v336_v24 }
  0x44   : > { %743 = vmatpush.bf16.msra.mxu0 %v1310_v4  ;;  %v1728_v33 = vld [vmem:[#allocation6 + $0x1f4] sm:$0xf0]  ;;  %v1694_v34 = vld [vmem:[#allocation6 + $0xec] sm:$0xf]  ;;  %v1399_v35 = vld [vmem:[#allocation6 + $0xf8] sm:$0xf0]  ;;  %v1410_v42 = vor.u32 %v1697_v27, %v1407_v28  ;;  %v1398_v43 = vor.u32 %v1696_v30, %v1397_v29 }
  0x45   : > { %756 = vmatpush.bf16.msra.mxu1 %v1438_v5  ;;  %v1726_v39 = vld [vmem:[#allocation6 + $0x1ec] sm:$0xf]  ;;  %v1527_v40 = vld [vmem:[#allocation6 + $0x1f8] sm:$0xf0]  ;;  %v1526_v44 = vor.u32 %v1728_v33, %v1525_v31  ;;  %v1402_v45 = vor.u32 %v1694_v34, %v1399_v35  ;;  %v1381_v46 = vld [vmem:[#allocation6 + $0xc8] sm:$0xf]  ;;  %v2244_v50 = vpack.c.b16 %v412_v36, %v412_v36  ;;  %v2246_v54 = vpack.c.b16 %v413_v41, %v413_v41 }
  0x46   : > { %769 = vmatpush.bf16.msra.mxu2 %v1314_v6  ;;  %v1692_v47 = vld [vmem:[#allocation6 + $0xd4] sm:$0xf0]  ;;  %v1509_v48 = vld [vmem:[#allocation6 + $0x1c8] sm:$0xf]  ;;  %v1530_v49 = vor.u32 %v1726_v39, %v1527_v40  ;;  %v1690_v52 = vld [vmem:[#allocation6 + $0xcc] sm:$0xf] }
  0x47   : > { %782 = vmatpush.bf16.msra.mxu3 %v1442_v10  ;;  %v1724_v51 = vld [vmem:[#allocation6 + $0x1d4] sm:$0xf0]  ;;  %v1383_v53 = vld [vmem:[#allocation6 + $0xd8] sm:$0xf0]  ;;  %v1722_v55 = vld [vmem:[#allocation6 + $0x1cc] sm:$0xf]  ;;  %v1382_v57 = vor.u32 %v1692_v47, %v1381_v46 }
  0x48   : > { %744 = vmatpush.bf16.msra.mxu0 %v1294_v16  ;;  %v1511_v56 = vld [vmem:[#allocation6 + $0x1d8] sm:$0xf0]  ;;  %v1510_v58 = vor.u32 %v1724_v51, %v1509_v48  ;;  %v1386_v59 = vor.u32 %v1690_v52, %v1383_v53  ;;  %v1365_v60 = vld [vmem:[#allocation6 + $0xa8] sm:$0xf]  ;;  %v1688_v61 = vld [vmem:[#allocation6 + $0xb4] sm:$0xf0] }
  0x49   : > { %757 = vmatpush.bf16.msra.mxu1 %v1422_v20  ;;  %v1493_v62 = vld [vmem:[#allocation6 + $0x1a8] sm:$0xf]  ;;  %v1514_v63 = vor.u32 %v1722_v55, %v1511_v56  ;;  %v1720_v0 = vld [vmem:[#allocation6 + $0x1b4] sm:$0xf0]  ;;  %v1686_v1 = vld [vmem:[#allocation6 + $0xac] sm:$0xf]  ;;  %v1366_v5 = vor.u32 %v1688_v61, %v1365_v60 }
  0x4a   : > { %770 = vmatpush.bf16.msra.mxu2 %v1298_v21  ;;  %v1367_v2 = vld [vmem:[#allocation6 + $0xb8] sm:$0xf0]  ;;  %v1718_v3 = vld [vmem:[#allocation6 + $0x1ac] sm:$0xf]  ;;  %v1494_v6 = vor.u32 %v1720_v0, %v1493_v62  ;;  %v1349_v8 = vld [vmem:[#allocation6 + $0x88] sm:$0xf] }
  0x4b   : > { %783 = vmatpush.bf16.msra.mxu3 %v1426_v25  ;;  %v1495_v4 = vld [vmem:[#allocation6 + $0x1b8] sm:$0xf0]  ;;  %v1370_v7 = vor.u32 %v1686_v1, %v1367_v2  ;;  %v1684_v9 = vld [vmem:[#allocation6 + $0x94] sm:$0xf0]  ;;  %v1477_v10 = vld [vmem:[#allocation6 + $0x188] sm:$0xf] }
  0x4c   : > { %745 = vmatpush.bf16.msra.mxu0 %v1278_v32  ;;  %v1498_v11 = vor.u32 %v1718_v3, %v1495_v4  ;;  %v1716_v12 = vld [vmem:[#allocation6 + $0x194] sm:$0xf0]  ;;  %v1682_v13 = vld [vmem:[#allocation6 + $0x8c] sm:$0xf]  ;;  %v1351_v14 = vld [vmem:[#allocation6 + $0x98] sm:$0xf0]  ;;  %v1350_v17 = vor.u32 %v1684_v9, %v1349_v8 }
  0x4d   : > { %758 = vmatpush.bf16.msra.mxu1 %v1406_v37  ;;  %v1714_v15 = vld [vmem:[#allocation6 + $0x18c] sm:$0xf]  ;;  %v1479_v16 = vld [vmem:[#allocation6 + $0x198] sm:$0xf0]  ;;  %v1478_v18 = vor.u32 %v1716_v12, %v1477_v10  ;;  %v1354_v19 = vor.u32 %v1682_v13, %v1351_v14  ;;  %v1333_v20 = vld [vmem:[#allocation6 + $0x68] sm:$0xf] }
  0x4e   : > { %771 = vmatpush.bf16.msra.mxu2 %v1282_v38  ;;  %v1680_v21 = vld [vmem:[#allocation6 + $0x74] sm:$0xf0]  ;;  %v1461_v22 = vld [vmem:[#allocation6 + $0x168] sm:$0xf]  ;;  %v1482_v23 = vor.u32 %v1714_v15, %v1479_v16  ;;  %v1678_v25 = vld [vmem:[#allocation6 + $0x6c] sm:$0xf] }
  0x4f   : > { %784 = vmatpush.bf16.msra.mxu3 %v1410_v42  ;;  %746 = vmatmul.bf16.vlgmr.msra.gmra.mxu0 %v2244_v50  ;;  %v1712_v24 = vld [vmem:[#allocation6 + $0x174] sm:$0xf0]  ;;  %v1335_v26 = vld [vmem:[#allocation6 + $0x78] sm:$0xf0]  ;;  %v1710_v27 = vld [vmem:[#allocation6 + $0x16c] sm:$0xf]  ;;  %v1334_v29 = vor.u32 %v1680_v21, %v1333_v20 }
  0x50   : > { %790 = vmatpush.bf16.msrb.mxu0 %v1398_v43  ;;  %759 = vmatmul.bf16.vlgmr.msra.gmra.mxu1 %v2246_v54  ;;  %v1463_v28 = vld [vmem:[#allocation6 + $0x178] sm:$0xf0]  ;;  %v1462_v30 = vor.u32 %v1712_v24, %v1461_v22  ;;  %v1338_v31 = vor.u32 %v1678_v25, %v1335_v26  ;;  %v1317_v32 = vld [vmem:[#allocation6 + $0x48] sm:$0xf]  ;;  %v1676_v33 = vld [vmem:[#allocation6 + $0x54] sm:$0xf0] }
  0x51   : > { %803 = vmatpush.bf16.msrb.mxu1 %v1526_v44  ;;  %772 = vmatmul.bf16.vlgmr.msra.gmra.mxu2 %v2244_v50  ;;  %v1445_v34 = vld [vmem:[#allocation6 + $0x148] sm:$0xf]  ;;  %v1466_v35 = vor.u32 %v1710_v27, %v1463_v28  ;;  %v1708_v36 = vld [vmem:[#allocation6 + $0x154] sm:$0xf0]  ;;  %v1674_v37 = vld [vmem:[#allocation6 + $0x4c] sm:$0xf]  ;;  %v1318_v41 = vor.u32 %v1676_v33, %v1317_v32 }
  0x52   : > { %816 = vmatpush.bf16.msrb.mxu2 %v1402_v45  ;;  %785 = vmatmul.bf16.vlgmr.msra.gmra.mxu3 %v2246_v54  ;;  %v1319_v38 = vld [vmem:[#allocation6 + $0x58] sm:$0xf0]  ;;  %v1706_v39 = vld [vmem:[#allocation6 + $0x14c] sm:$0xf]  ;;  %v1446_v42 = vor.u32 %v1708_v36, %v1445_v34  ;;  %v1301_v44 = vld [vmem:[#allocation6 + $0x28] sm:$0xf] }
  0x53   : > { %829 = vmatpush.bf16.msrb.mxu3 %v1530_v49  ;;  %v1447_v40 = vld [vmem:[#allocation6 + $0x158] sm:$0xf0]  ;;  %v1322_v43 = vor.u32 %v1674_v37, %v1319_v38  ;;  %v1672_v45 = vld [vmem:[#allocation6 + $0x34] sm:$0xf0]  ;;  %v1429_v46 = vld [vmem:[#allocation6 + $0x128] sm:$0xf] }
  0x54   : > { %791 = vmatpush.bf16.msrb.mxu0 %v1382_v57  ;;  %v1450_v47 = vor.u32 %v1706_v39, %v1447_v40  ;;  %v1704_v48 = vld [vmem:[#allocation6 + $0x134] sm:$0xf0]  ;;  %v1670_v49 = vld [vmem:[#allocation6 + $0x2c] sm:$0xf]  ;;  %v1303_v51 = vld [vmem:[#allocation6 + $0x38] sm:$0xf0]  ;;  %v1302_v55 = vor.u32 %v1672_v45, %v1301_v44 }
  0x55   : > { %804 = vmatpush.bf16.msrb.mxu1 %v1510_v58  ;;  %v1702_v52 = vld [vmem:[#allocation6 + $0x12c] sm:$0xf]  ;;  %v1431_v53 = vld [vmem:[#allocation6 + $0x138] sm:$0xf0]  ;;  %v1430_v56 = vor.u32 %v1704_v48, %v1429_v46  ;;  %v1306_v57 = vor.u32 %v1670_v49, %v1303_v51  ;;  %v1285_v58 = vld [vmem:[#allocation6 + $0x8] sm:$0xf] }
  0x56   : > { %817 = vmatpush.bf16.msrb.mxu2 %v1386_v59  ;;  %v1668_v59 = vld [vmem:[#allocation6 + $0x14] sm:$0xf0]  ;;  %v1413_v60 = vld [vmem:[#allocation6 + $0x108] sm:$0xf]  ;;  %v1434_v61 = vor.u32 %v1702_v52, %v1431_v53  ;;  %v1287_v0 = vld [vmem:[#allocation6 + $0x18] sm:$0xf0] }
  0x57   : > { %830 = vmatpush.bf16.msrb.mxu3 %v1514_v63  ;;  %v1700_v62 = vld [vmem:[#allocation6 + $0x114] sm:$0xf0]  ;;  %v1666_v63 = vld [vmem:[#allocation6 + $0xc] sm:$0xf]  ;;  %v1415_v2 = vld [vmem:[#allocation6 + $0x118] sm:$0xf0]  ;;  %v1286_v3 = vor.u32 %v1668_v59, %v1285_v58 }
  0x58   : > { %792 = vmatpush.bf16.msrb.mxu0 %v1366_v5  ;;  %v1698_v1 = vld [vmem:[#allocation6 + $0x10c] sm:$0xf]  ;;  %v1414_v4 = vor.u32 %v1700_v62, %v1413_v60  ;;  %v1290_v5 = vor.u32 %v1666_v63, %v1287_v0  ;;  %v1744_v8 = vld [vmem:[#allocation9 + $0x74] sm:$0xf0]  ;;  %v1743_v9 = vld [vmem:[#allocation9 + $0x74] sm:$0xf] }
  0x59   : > { %805 = vmatpush.bf16.msrb.mxu1 %v1494_v6  ;;  %v1418_v6 = vor.u32 %v1698_v1, %v1415_v2  ;;  %v1581_v13 = vld [vmem:[#allocation9 + $0x60] sm:$0xf]  ;;  %v1742_v14 = vld [vmem:[#allocation9 + $0x64] sm:$0xf0]  ;;  %v1741_v15 = vld [vmem:[#allocation9 + $0x64] sm:$0xf] }
  0x5a   : > { %818 = vmatpush.bf16.msrb.mxu2 %v1370_v7  ;;  %v1589_v7 = vld [vmem:[#allocation9 + $0x70] sm:$0xf]  ;;  %v1582_v16 = vor.u32 %v1742_v14, %v1581_v13  ;;  %v1760_v20 = vld [vmem:[#allocation9 + $0xf4] sm:$0xf0]  ;;  %v1759_v21 = vld [vmem:[#allocation9 + $0xf4] sm:$0xf] }
  0x5b   : > { %831 = vmatpush.bf16.msrb.mxu3 %v1498_v11  ;;  %v1590_v10 = vor.u32 %v1744_v8, %v1589_v7  ;;  %v1591_v11 = vld [vmem:[#allocation9 + $0x78] sm:$0xf0]  ;;  %v1740_v24 = vld [vmem:[#allocation9 + $0x54] sm:$0xf0]  ;;  %v1739_v25 = vld [vmem:[#allocation9 + $0x54] sm:$0xf] }
  0x5c   : > { %793 = vmatpush.bf16.msrb.mxu0 %v1350_v17  ;;  %v1594_v12 = vor.u32 %v1743_v9, %v1591_v11  ;;  %v1583_v17 = vld [vmem:[#allocation9 + $0x68] sm:$0xf0]  ;;  %v1575_v27 = vld [vmem:[#allocation9 + $0x58] sm:$0xf0]  ;;  %v1565_v34 = vld [vmem:[#allocation9 + $0x40] sm:$0xf] }
  0x5d   : > { %806 = vmatpush.bf16.msrb.mxu1 %v1478_v18  ;;  %v1586_v18 = vor.u32 %v1741_v15, %v1583_v17  ;;  %v1578_v28 = vor.u32 %v1739_v25, %v1575_v27  ;;  %v1647_v33 = vld [vmem:[#allocation9 + $0xe8] sm:$0xf0]  ;;  %v1737_v38 = vld [vmem:[#allocation9 + $0x44] sm:$0xf]  ;;  %v1637_v40 = vld [vmem:[#allocation9 + $0xd0] sm:$0xf] }
  0x5e   : > { %819 = vmatpush.bf16.msrb.mxu2 %v1354_v19  ;;  %v1653_v19 = vld [vmem:[#allocation9 + $0xf0] sm:$0xf]  ;;  %v1567_v39 = vld [vmem:[#allocation9 + $0x48] sm:$0xf0]  ;;  %v1639_v44 = vld [vmem:[#allocation9 + $0xd8] sm:$0xf0] }
  0x5f   : > { %832 = vmatpush.bf16.msrb.mxu3 %v1482_v23  ;;  %v1573_v23 = vld [vmem:[#allocation9 + $0x50] sm:$0xf]  ;;  %v1736_v48 = vld [vmem:[#allocation9 + $0x34] sm:$0xf0]  ;;  %v1735_v49 = vld [vmem:[#allocation9 + $0x34] sm:$0xf] }
  0x60   : > { %794 = vmatpush.bf16.msrb.mxu0 %v1334_v29  ;;  %v1574_v26 = vor.u32 %v1740_v24, %v1573_v23  ;;  %v1645_v29 = vld [vmem:[#allocation9 + $0xe0] sm:$0xf]  ;;  %v1559_v52 = vld [vmem:[#allocation9 + $0x38] sm:$0xf0]  ;;  %v1631_v58 = vld [vmem:[#allocation9 + $0xc8] sm:$0xf0] }
  0x61   : > { %807 = vmatpush.bf16.msrb.mxu1 %v1462_v30  ;;  %v1758_v30 = vld [vmem:[#allocation9 + $0xe4] sm:$0xf0]  ;;  %v1629_v53 = vld [vmem:[#allocation9 + $0xc0] sm:$0xf]  ;;  %v1733_v62 = vld [vmem:[#allocation9 + $0x24] sm:$0xf] }
  0x62   : > { %820 = vmatpush.bf16.msrb.mxu2 %v1338_v31  ;;  %v1757_v31 = vld [vmem:[#allocation9 + $0xe4] sm:$0xf]  ;;  %v1646_v32 = vor.u32 %v1758_v30, %v1645_v29  ;;  %v1549_v59 = vld [vmem:[#allocation9 + $0x20] sm:$0xf]  ;;  %v1551_v63 = vld [vmem:[#allocation9 + $0x28] sm:$0xf0] }
  0x63   : > { %833 = vmatpush.bf16.msrb.mxu3 %v1466_v35  ;;  %v1738_v35 = vld [vmem:[#allocation9 + $0x44] sm:$0xf0]  ;;  %v1650_v36 = vor.u32 %v1757_v31, %v1647_v33  ;;  %v2256_v2 = vld [vmem:[#allocation8] sm:$0xf]  ;;  %v1541_v11 = vld [vmem:[#allocation9 + $0x10] sm:$0xf] }
  0x64   : > { %795 = vmatpush.bf16.msrb.mxu0 %v1318_v41  ;;  %v1566_v37 = vor.u32 %v1738_v35, %v1565_v34  ;;  %v1570_v41 = vor.u32 %v1737_v38, %v1567_v39  ;;  %v403_v7 = vperm.slane %v2256_v2, 0  ;;  %v1623_v9 = vld [vmem:[#allocation9 + $0xb8] sm:$0xf0]  ;;  %v1731_v13 = vld [vmem:[#allocation9 + $0x14] sm:$0xf]  ;;  %v404_v30 = vperm.slane %v2256_v2, 1 }
  0x65   : > { %808 = vmatpush.bf16.msrb.mxu1 %v1446_v42  ;;  %v1756_v42 = vld [vmem:[#allocation9 + $0xd4] sm:$0xf0]  ;;  %v1543_v15 = vld [vmem:[#allocation9 + $0x18] sm:$0xf0]  ;;  %v1533_v24 = vld [vmem:[#allocation9] sm:$0xf] }
  0x66   : > { %821 = vmatpush.bf16.msrb.mxu2 %v1322_v43  ;;  %v1755_v43 = vld [vmem:[#allocation9 + $0xd4] sm:$0xf]  ;;  %v1638_v45 = vor.u32 %v1756_v42, %v1637_v40  ;;  %v1546_v17 = vor.u32 %v1731_v13, %v1543_v15  ;;  %v1730_v25 = vld [vmem:[#allocation9 + $0x4] sm:$0xf0]  ;;  %v1535_v29 = vld [vmem:[#allocation9 + $0x8] sm:$0xf0] }
  0x67   : > { %834 = vmatpush.bf16.msrb.mxu3 %v1450_v47  ;;  %v1642_v46 = vor.u32 %v1755_v43, %v1639_v44  ;;  %v1557_v47 = vld [vmem:[#allocation9 + $0x30] sm:$0xf]  ;;  %v1748_v33 = vld [vmem:[#allocation9 + $0x94] sm:$0xf0]  ;;  %v1597_v44 = vld [vmem:[#allocation9 + $0x80] sm:$0xf] }
  0x68   : > { %796 = vmatpush.bf16.msrb.mxu0 %v1302_v55  ;;  %v1558_v51 = vor.u32 %v1736_v48, %v1557_v47  ;;  %v1754_v55 = vld [vmem:[#allocation9 + $0xc4] sm:$0xf0]  ;;  %s1761_s7 = sshll.u32 %s2065_s21, 4  ;;  %s326_s28 = scalar_lea.vmem [#allocation11], %s1274_s10 }
  0x69   : > { %809 = vmatpush.bf16.msrb.mxu1 %v1430_v56  ;;  %v1562_v56 = vor.u32 %v1735_v49, %v1559_v52  ;;  %v1630_v60 = vor.u32 %v1754_v55, %v1629_v53  ;;  %s1141_s24 = scalar_lea.hbm %s2309_s5, %s1761_s7  ;;  %s1143_s30 = sshll.u32 %s326_s28, 4  ;;  %s1144_s30 = int_to_ptr.vmem [resolvable:$true] %s1143_s30 }
  0x6a   : > { %822 = vmatpush.bf16.msrb.mxu2 %v1306_v57  ;;  %v1753_v57 = vld [vmem:[#allocation9 + $0xc4] sm:$0xf]  ;;  %s1145_s6 = sshll.u32 %s1141_s24, 4  ;;  %s1130_s21 = scalar_lea.sflag [#allocation5], %s2225_s11  ;;  %s1146_s6 = int_to_ptr.hbm [resolvable:$true] %s1145_s6 }
  0x6b   : > { %835 = vmatpush.bf16.msrb.mxu3 %v1434_v61  ;;  %v1734_v61 = vld [vmem:[#allocation9 + $0x24] sm:$0xf0]  ;;  %v1634_v0 = vor.u32 %v1753_v57, %v1631_v58  ;;  %s1997_s9 = sshra.s32 %s1146_s6, 4  ;;  %s2003_s25 = scalar_lea.hbm %s2309_s5, 32  ;;  %s1998_s9 = int_to_ptr.hbm [resolvable:$true] %s1997_s9 }
  0x6c   : > { %797 = vmatpush.bf16.msrb.mxu0 %v1286_v3  ;;  %v1550_v1 = vor.u32 %v1734_v61, %v1549_v59  ;;  %v1554_v3 = vor.u32 %v1733_v62, %v1551_v63  ;;  %s1999_s26 = scalar_lea.hbm %s1998_s9, 16  ;;  %p2004_p10 = scmp.lt.s32.totalorder %s1998_s9, %s2309_s5 }
  0x6d   : > { %810 = vmatpush.bf16.msrb.mxu1 %v1414_v4  ;;  %v1621_v4 = vld [vmem:[#allocation9 + $0xb0] sm:$0xf]  ;;  %p2000_p1 = scmp.ne.s32.totalorder %s1998_s9, %s1999_s26  ;;  %p2005_p11 = scmp.lt.s32.totalorder %s2003_s25, %s1999_s26 }
  0x6e   : > { %823 = vmatpush.bf16.msrb.mxu2 %v1290_v5  ;;  %v1752_v5 = vld [vmem:[#allocation9 + $0xb4] sm:$0xf0] }
  0x6f   : > { %836 = vmatpush.bf16.msrb.mxu3 %v1418_v6  ;;  %798 = vmatmul.bf16.vlgmr.msrb.gmra.mxu0 %v2244_v50  ;;  %v1751_v6 = vld [vmem:[#allocation9 + $0xb4] sm:$0xf]  ;;  %v1622_v8 = vor.u32 %v1752_v5, %v1621_v4  ;;  %p2001_p3 = pnand %p2000_p1, %p2203_p4  ;;  %p2006_p12 = por %p2005_p11, %p2004_p10 }
  0x70   : > { %811 = vmatmul.bf16.vlgmr.msrb.gmra.mxu1 %v2246_v54  ;;  %1058 = vmatpush.bf16.msra.mxu0 %v1590_v10  ;;  %v1626_v10 = vor.u32 %v1751_v6, %v1623_v9 }
  0x71   : > { %824 = vmatmul.bf16.vlgmr.msrb.gmra.mxu2 %v2244_v50  ;;  %v1654_v50 = vor.u32 %v1760_v20, %v1653_v19  ;;  %v1750_v19 = vld [vmem:[#allocation9 + $0xa4] sm:$0xf0]  ;;  %v1749_v20 = vld [vmem:[#allocation9 + $0xa4] sm:$0xf]  ;;  %p2002_p9 = pneg %p2001_p3 }
  0x72   : > { %837 = vmatmul.bf16.vlgmr.msrb.gmra.mxu3 %v2246_v54  ;;  %1084 = vmatpush.bf16.msra.mxu2 %v1594_v12  ;;  %v1655_v54 = vld [vmem:[#allocation9 + $0xf8] sm:$0xf0]  ;;  %v1732_v12 = vld [vmem:[#allocation9 + $0x14] sm:$0xf0] }
  0x73   : > { %v1658_v22 = vor.u32 %v1759_v21, %v1655_v54  ;;  %1071 = vmatpush.bf16.msra.mxu1 %v1654_v50  ;;  %v1542_v14 = vor.u32 %v1732_v12, %v1541_v11  ;;  %v406_v11 = vperm.slane %v2256_v2, 3  ;;  %p2007_p13 = pnand %p2006_p12, %p2002_p9 }
  0x74   : > { %1059 = vmatpush.bf16.msra.mxu0 %v1582_v16 }
  0x75   : > { %1097 = vmatpush.bf16.msra.mxu3 %v1658_v22  ;;  %v1615_v22 = vld [vmem:[#allocation9 + $0xa8] sm:$0xf0] }
  0x76   : > { %1085 = vmatpush.bf16.msra.mxu2 %v1586_v18  ;;  %v1613_v18 = vld [vmem:[#allocation9 + $0xa0] sm:$0xf]  ;;  %v1618_v23 = vor.u32 %v1749_v20, %v1615_v22 }
  0x77   : > { %1072 = vmatpush.bf16.msra.mxu1 %v1646_v32  ;;  %v1614_v54 = vor.u32 %v1750_v19, %v1613_v18  ;;  %v1605_v32 = vld [vmem:[#allocation9 + $0x90] sm:$0xf] }
  0x78   : > { %1060 = vmatpush.bf16.msra.mxu0 %v1574_v26  ;;  %v1729_v26 = vld [vmem:[#allocation9 + $0x4] sm:$0xf]  ;;  %v1606_v35 = vor.u32 %v1748_v33, %v1605_v32 }
  0x79   : > { %1098 = vmatpush.bf16.msra.mxu3 %v1650_v36  ;;  %v1538_v31 = vor.u32 %v1729_v26, %v1535_v29  ;;  %v1747_v36 = vld [vmem:[#allocation9 + $0x94] sm:$0xf] }
  0x7a   : > { %1086 = vmatpush.bf16.msra.mxu2 %v1578_v28  ;;  %v1534_v28 = vor.u32 %v1730_v25, %v1533_v24  ;;  %v1119_v25 = vld [vmem:[%s2308_s4] sm:$0x3] }
  0x7b   : > { %1073 = vmatpush.bf16.msra.mxu1 %v1638_v45  ;;  %v1746_v45 = vld [vmem:[#allocation9 + $0x84] sm:$0xf0]  ;;  %v1121_v26 = vperm.slane %v1119_v25, 0  ;;  %v1122_v32 = vperm.slane %v1119_v25, 1 }
  0x7c   : > { %1061 = vmatpush.bf16.msra.mxu0 %v1566_v37  ;;  %v1607_v37 = vld [vmem:[#allocation9 + $0x98] sm:$0xf0]  ;;  %v1598_v49 = vor.u32 %v1746_v45, %v1597_v44 }
  0x7d   : > { %1099 = vmatpush.bf16.msra.mxu3 %v1642_v46  ;;  %v1610_v40 = vor.u32 %v1747_v36, %v1607_v37  ;;  %v1745_v46 = vld [vmem:[#allocation9 + $0x84] sm:$0xf] }
  0x7e   : > { %1087 = vmatpush.bf16.msra.mxu2 %v1570_v41 }
  0x7f   : > { %1074 = vmatpush.bf16.msra.mxu1 %v1630_v60 }
  0x80   : > { %1062 = vmatpush.bf16.msra.mxu0 %v1558_v51  ;;  %v1599_v51 = vld [vmem:[#allocation9 + $0x88] sm:$0xf0] }
  0x81   : > { %1100 = vmatpush.bf16.msra.mxu3 %v1634_v0  ;;  %v1602_v53 = vor.u32 %v1745_v46, %v1599_v51 }
  0x82   : > { %1088 = vmatpush.bf16.msra.mxu2 %v1562_v56 }
  0x83   : > { %1075 = vmatpush.bf16.msra.mxu1 %v1622_v8 }
  0x84   : > { %1063 = vmatpush.bf16.msra.mxu0 %v1550_v1  ;;  %v405_v1 = vperm.slane %v2256_v2, 2 }
  0x85   : > { %1101 = vmatpush.bf16.msra.mxu3 %v1626_v10 }
  0x86   : > { %1089 = vmatpush.bf16.msra.mxu2 %v1554_v3 }
  0x87   : > { %1076 = vmatpush.bf16.msra.mxu1 %v1614_v54 }
  0x88   : > { %1064 = vmatpush.bf16.msra.mxu0 %v1542_v14 }
  0x89   : > { %1102 = vmatpush.bf16.msra.mxu3 %v1618_v23 }
  0x8a   : > { %1090 = vmatpush.bf16.msra.mxu2 %v1546_v17 }
  0x8b   : > { %1077 = vmatpush.bf16.msra.mxu1 %v1606_v35 }
  0x8c   : > { %1065 = vmatpush.bf16.msra.mxu0 %v1534_v28 }
  0x8d   : > { %1103 = vmatpush.bf16.msra.mxu3 %v1610_v40 }
  0x8e   : > { %1091 = vmatpush.bf16.msra.mxu2 %v1538_v31 }
  0x8f   : > { %1078 = vmatpush.bf16.msra.mxu1 %v1598_v49 }
  0x91   : > { %1104 = vmatpush.bf16.msra.mxu3 %v1602_v53 }
  0xcc   : > { %v747_v16 = vpop.f32.mrf.mxu0 }
  0xcd   : > { %v748_v21 = vadd.f32 %v747_v16, %v403_v7  ;;  %v760_v50 = vpop.f32.mrf.mxu1 }
  0xcf   : > { %v761_v27 = vadd.f32 %v760_v50, %v748_v21 }
  0xd1   : > { %v844_v34 = vmul.f32 0.044715, %v761_v27  ;;  %v842_v7 = vmul.f32 0.5, %v761_v27 }
  0xd3   : > { %v846_v38 = vmul.f32 %v844_v34, %v761_v27 }
  0xd4   : > { %v773_v39 = vpop.f32.mrf.mxu2  ;;  %v749_v43 = vpop.f32.mrf.mxu0 }
  0xd5   : > { %v774_v41 = vadd.f32 %v773_v39, %v404_v30  ;;  %v786_v42 = vpop.f32.mrf.mxu3  ;;  %v762_v47 = vpop.f32.mrf.mxu1  ;;  %v848_v48 = vmul.f32 %v846_v38, %v761_v27 }
  0xd7   : > { %v787_v52 = vadd.f32 %v786_v42, %v774_v41  ;;  %v850_v55 = vadd.f32 %v848_v48, %v761_v27 }
  0xd9   : > { %v845_v56 = vmul.f32 0.044715, %v787_v52  ;;  %v852_v59 = vmul.f32 0.7978845, %v850_v55  ;;  %v843_v18 = vmul.f32 0.5, %v787_v52 }
  0xdb   : > { %v847_v57 = vmul.f32 %v845_v56, %v787_v52  ;;  %1859 = vtanh.f32 %v852_v59 }
  0xdc   : > { %v775_v58 = vpop.f32.mrf.mxu2 }
  0xdd   : > { %v788_v60 = vpop.f32.mrf.mxu3  ;;  %v849_v61 = vmul.f32 %v847_v57, %v787_v52 }
  0xdf   : > { %v851_v62 = vadd.f32 %v849_v61, %v787_v52 }
  0xe1   : > { %v853_v63 = vmul.f32 0.7978845, %v851_v62  ;;  %v1860_v0 = vpop.eup %1859 }
  0xe2   : > { %v856_v3 = vadd.f32 1.0, %v1860_v0 }
  0xe3   : > { %1861 = vtanh.f32 %v853_v63 }
  0xe4   : > { %v858_v10 = vmul.f32 %v856_v3, %v842_v7 }
  0xe9   : > { %v1862_v8 = vpop.eup %1861 }
  0xea   : > { %v857_v13 = vadd.f32 1.0, %v1862_v8 }
  0xec   : > { %v799_v4 = vpop.f32.mrf.mxu0  ;;  %v859_v50 = vmul.f32 %v857_v13, %v843_v18 }
  0xed   : > { %v800_v5 = vadd.f32 %v799_v4, %v405_v1  ;;  %v812_v6 = vpop.f32.mrf.mxu1 }
  0xef   : > { %v813_v9 = vadd.f32 %v812_v6, %v800_v5 }
  0xf1   : > { %v860_v12 = vmul.f32 %v858_v10, %v813_v9 }
  0xf3   : > { %v862_v14 = vpack.c.bf16 %v860_v12, %v860_v12 }
  0xf4   : > { %v825_v15 = vpop.f32.mrf.mxu2  ;;  %v801_v19 = vpop.f32.mrf.mxu0 }
  0xf5   : > { %v826_v16 = vadd.f32 %v825_v15, %v406_v11  ;;  %v838_v17 = vpop.f32.mrf.mxu3  ;;  %v814_v20 = vpop.f32.mrf.mxu1  ;;  %1066 = vmatmul.bf16.vlgmr.msra.gmra.mxu0 %v862_v14  ;;  %1092 = vmatmul.bf16.vlgmr.msra.gmra.mxu2 %v862_v14 }
  0xf7   : > { %v839_v21 = vadd.f32 %v838_v17, %v826_v16 }
  0xf9   : > { %v861_v54 = vmul.f32 %v859_v50, %v839_v21 }
  0xfb   : > { %v863_v22 = vpack.c.bf16 %v861_v54, %v861_v54 }
  0xfc   : > { %v827_v23 = vpop.f32.mrf.mxu2 }
  0xfd   : > { %v840_v24 = vpop.f32.mrf.mxu3  ;;  %1079 = vmatmul.bf16.vlgmr.msra.gmra.mxu1 %v863_v22  ;;  %1105 = vmatmul.bf16.vlgmr.msra.gmra.mxu3 %v863_v22 }
 0x172   : > { %v1067_v2 = vpop.f32.mrf.mxu0 }
 0x178   : > { %v1093_v27 = vpop.f32.mrf.mxu2 }
 0x17a   : > { %v1080_v28 = vpop.f32.mrf.mxu1  ;;  %v1069_v30 = vpop.f32.mrf.mxu0 }
 0x17b   : > { %v1081_v29 = vadd.f32 %v1080_v28, %v1067_v2 }
 0x17d   : > { %v1125_v31 = vadd.f32 %v1121_v26, %v1081_v29 }
 0x17f   : > { %1127 = vst [vmem:[%s326_s28] sm:$0xff] %v1125_v31 }
 0x180   : > { %v1106_v33 = vpop.f32.mrf.mxu3  ;;  %v1095_v35 = vpop.f32.mrf.mxu2 }
 0x181   : > { %v1107_v34 = vadd.f32 %v1106_v33, %v1093_v27 }
 0x182   : > { %v1082_v36 = vpop.f32.mrf.mxu1 }
 0x183   : > { %v1126_v37 = vadd.f32 %v1122_v32, %v1107_v34 }
 0x185   : > { %1128 = vst [vmem:[%s326_s28 + $0x8] sm:$0xff] %v1126_v37 }
 0x186   : > { %2010 = shalt.err (!%p2007_p13)
}
 0x187   : > { %1776 = dma.vmem_to_hbm [thread:$0]  (%p2203_p4), %s1144_s30, 256, %s1146_s6, %s1130_s21  }
 0x188   : > { %v1108_v38 = vpop.f32.mrf.mxu3 }
 0x189 PF: > { %s1157_s11 = sand.u32 1, %s2053_s18   ;;  %p1793_p0 = pnand %p1265_p6, %p2211_p7 }
 0x18a   : > { %s1158_s7 = scalar_lea.sflag [#allocation5], %s1157_s11 }
 0x18b   : > { %p1794_p2 = pneg %p1793_p0 }
 0x18d   : > { %2048 = dma.done.wait (%p1794_p2), %s1158_s7, 256  }
 0x18e   : > { %2050 = vsyncadd (%p1794_p2), %s1158_s7, 4294967040  ;;  %s23_s23 = sadd.s32 1, %s2073_s23   ;;  %s2317_s18 = smov %s2057_s19 }
 0x18f   : > { %p20_p5 = scmp.ge.s32.totalorder %s23_s23, 4   ;;  %s2318_s19 = smov %s2061_s20 }
 0x190   : > { %s2319_s20 = smov %s2209_s13  ;;  %s2320_s21 = smov %s2069_s22 }
 0x191   : > { %s2321_s22 = smov %s2323_s8  ;;  %22 = sbr.rel (!%p20_p5) target bundleno = 8 (0x8), region = 108 }
 0x196   :  { %1164 = vsyncpa [#allocation4], 1 }
 0x197   :  { %1166 = vsyncpa [#allocation4 + $0x1], 1 }
 0x198   :  { %1167 = vsyncpa [#allocation7], 1 }
 0x199   :  { %1168 = vsyncpa [#allocation10], 1 }
 0x19a   :  { %1169 = vsyncpa [#allocation5], 1 }
 0x19b   :  { %1171 = vsyncpa [#allocation5 + $0x1], 1 }

</bundles_post_ra>
